<compile_context>
chip_gen: v5e
topology: v5e:2x2
jax: 0.10.0
libtpu: 0.0.40
codegen_flags: <defaults>
</compile_context>

<pallas_src>
import jax
import jax.numpy as jnp
from jax.experimental import pallas as pl
from jax.experimental.pallas import tpu as pltpu


def _round_up(x, m):
    return (x + m - 1) // m * m


def _physical_vmem_bytes():
    """Per-TensorCore physical VMEM (64 MiB on v7x, 128 MiB on v5e/v6e)."""
    try:
        return int(pltpu.get_tpu_info().vmem_capacity_bytes)
    except Exception:
        return 64 << 20  # conservative: smallest across supported generations


def resblock_kernel(x_ref, w1_ref, b1_ref, w2_ref, b2_ref, w3_ref, b3_ref, o_ref):
    """Whole-feature-width kernel: three MXU matmuls with f32 accumulation and a
    fused VPU epilogue (bias add, ReLU, residual).  Weights arrive pre-transposed
    to (in, out) and lane-padded, so every dot is a plain row-major matmul.  x is
    cast to the MXU dtype in-kernel; the residual uses the un-rounded f32 x."""
    x = x_ref[...]                       # (tile_b, Dp), native input dtype
    xf = x.astype(jnp.float32)
    wdt = w1_ref.dtype                   # MXU input dtype (f32 or bf16)

    h = jnp.dot(x.astype(wdt), w1_ref[...], preferred_element_type=jnp.float32)
    h = jnp.maximum(h + b1_ref[...], 0.0)

    h = jnp.dot(h.astype(wdt), w2_ref[...], preferred_element_type=jnp.float32)
    h = jnp.maximum(h + b2_ref[...], 0.0)

    h = jnp.dot(h.astype(wdt), w3_ref[...], preferred_element_type=jnp.float32)
    h = jnp.maximum(h + b3_ref[...], 0.0)

    o_ref[...] = (h + xf).astype(o_ref.dtype)


def prepare_resblock_params(params, *, compute_dtype=jnp.float32, lane=128):
    """One-time parameter prep (do this OUTSIDE the hot path, e.g. at load time).

    - transpose PyTorch (out, in) weights to (in, out),
    - zero-pad the feature dim to a multiple of 128 lanes (padded columns/rows
      stay exactly zero through every layer, so results are unchanged),
    - cast weights to the MXU compute dtype (bfloat16 recommended on v6e/v7x:
      halves HBM traffic / VMEM residency and uses bf16 MXU peak; keep float32
      only where bit-exactness vs PyTorch matters).  Biases stay f32 since they
      are added to the f32 accumulator.
    """
    d = params["w1"].shape[0]
    d_pad = _round_up(d, lane)

    def pad_w(w):
        wt = jnp.asarray(w, jnp.float32).T          # (in, out)
        out = jnp.zeros((d_pad, d_pad), compute_dtype)
        return out.at[:d, :d].set(wt.astype(compute_dtype))

    def pad_b(b):
        out = jnp.zeros((1, d_pad), jnp.float32)
        return out.at[0, :d].set(jnp.asarray(b, jnp.float32))

    return {
        "w1": pad_w(params["w1"]), "b1": pad_b(params["b1"]),
        "w2": pad_w(params["w2"]), "b2": pad_b(params["b2"]),
        "w3": pad_w(params["w3"]), "b3": pad_b(params["b3"]),
        "d": d, "d_pad": d_pad,
    }


def resblock_forward(x, prep, *, tile_b=None, out_dtype=None):
    """x: (B, D). prep: output of prepare_resblock_params. Returns (B, D)."""
    B, D = x.shape
    d = prep["d"]
    d_pad = prep["d_pad"]
    assert D == d, f"feature dim mismatch: x has {D}, params have {d}"

    compute_dtype = prep["w1"].dtype
    c_bytes = jnp.dtype(compute_dtype).itemsize
    x_bytes = jnp.dtype(x.dtype).itemsize
    out_dtype = x.dtype if out_dtype is None else jnp.dtype(out_dtype)
    o_bytes = jnp.dtype(out_dtype).itemsize

    # Sublane alignment for the (tile_b, d_pad) activation blocks.
    row_align = max(8, 32 // x_bytes, 32 // o_bytes)

    vmem_cap = _physical_vmem_bytes()
    vmem_budget = vmem_cap * 7 // 8                 # ~12% headroom
    # Worst-case (double-buffered) resident footprint: 3 weights + 3 biases.
    resident = 3 * 2 * (d_pad * d_pad * c_bytes + 8 * d_pad * 4)

    if tile_b is None:
        # Each grid step should move >= ~2 MiB of x+out traffic so the ~0.35 us
        # per-step overhead is amortized for small D; clamp to [256, 2048] rows;
        # keep >= 2 grid steps when the batch allows it (v7x megacore).
        t = max(256, min(2048, (2 << 20) // (d_pad * (x_bytes + o_bytes))))
        if B > 2 * row_align:
            t = min(t, _round_up(pl.cdiv(B, 2), row_align))
        t = min(_round_up(t, row_align), _round_up(B, row_align))
        tile_b = max(t, row_align)
    else:
        tile_b = max(_round_up(tile_b, row_align), row_align)

    def act_bytes(t):
        # Double-buffered x and out tiles + f32 intermediates the compiler keeps.
        return 2 * t * d_pad * (x_bytes + o_bytes) + 2 * t * d_pad * 4

    # Shrink tile_b until activations fit next to the resident weights.
    while tile_b > row_align and resident + act_bytes(tile_b) > vmem_budget:
        tile_b = max(_round_up(tile_b // 2, row_align), row_align)

    B_pad = _round_up(B, tile_b)
    grid = (B_pad // tile_b,)

    # Zero-copy path when already aligned; otherwise a single pad of the
    # remainder (padded rows/cols are sliced off below; padded feature columns
    # stay exactly zero through the kernel).
    if (B_pad, d_pad) != (B, D):
        x_in = jnp.pad(x, ((0, B_pad - B), (0, d_pad - D)))
    else:
        x_in = x

    # Advisory cost so XLA schedules/overlaps the custom call sensibly.
    flops = 3 * 2 * B_pad * d_pad * d_pad + 7 * B_pad * d_pad
    bytes_accessed = (
        B_pad * d_pad * x_bytes            # x
        + 3 * d_pad * d_pad * c_bytes      # weights
        + 3 * d_pad * 4                    # biases (f32)
        + B_pad * d_pad * o_bytes          # out
    )
    cost = pl.CostEstimate(flops=flops, transcendentals=0,
                           bytes_accessed=bytes_accessed)

    # Generation-aware scoped-VMEM policy: raise the limit whenever the working
    # set approaches the smallest scoped default (16 MiB on v5e); cap at the
    # physical per-core VMEM with headroom (never above 64 MiB parts' capacity).
    vmem_need = resident + act_bytes(tile_b)
    vmem_limit = None
    if vmem_need > 12 * 1024 * 1024:
        vmem_limit = min(int(vmem_need * 5 // 4), vmem_budget)

    args = (x_in, prep["w1"], prep["b1"], prep["w2"], prep["b2"],
            prep["w3"], prep["b3"])

    def call(single_buffer_resident):
        if single_buffer_resident:
            # Constant index_map -> never re-fetched; one buffer halves the
            # weights' VMEM footprint (matters most on v7x's 64 MiB VMEM).
            w_spec = pl.BlockSpec((d_pad, d_pad), lambda i: (0, 0),
                                  pipeline_mode=pl.Buffered(1))
            b_spec = pl.BlockSpec((1, d_pad), lambda i: (0, 0),
                                  pipeline_mode=pl.Buffered(1))
        else:
            w_spec = pl.BlockSpec((d_pad, d_pad), lambda i: (0, 0))
            b_spec = pl.BlockSpec((1, d_pad), lambda i: (0, 0))
        x_spec = pl.BlockSpec((tile_b, d_pad), lambda i: (i, 0))
        o_spec = pl.BlockSpec((tile_b, d_pad), lambda i: (i, 0))
        return pl.pallas_call(
            resblock_kernel,
            out_shape=jax.ShapeDtypeStruct((B_pad, d_pad), out_dtype),
            grid_spec=pltpu.PrefetchScalarGridSpec(
                num_scalar_prefetch=0,
                grid=grid,
                in_specs=[x_spec, w_spec, b_spec, w_spec, b_spec, w_spec, b_spec],
                out_specs=o_spec,
            ),
            compiler_params=pltpu.CompilerParams(
                dimension_semantics=("parallel",),
                vmem_limit_bytes=vmem_limit,
            ),
            cost_estimate=cost,
        )(*args)

    try:
        out = call(True)
    except Exception:
        # Fallback for jaxlibs that reject single-buffered auto-pipelining;
        # identical semantics with default double-buffering.
        out = call(False)

    if (B_pad, d_pad) != (B, D):
        out = out[:B, :D]
    return out


def resblock_reference(x, params):
    """Pure-JAX reference matching the PyTorch forward exactly."""
    h = jnp.maximum(x @ params["w1"].T + params["b1"], 0.0)
    h = jnp.maximum(h @ params["w2"].T + params["b2"], 0.0)
    h = jnp.maximum(h @ params["w3"].T + params["b3"], 0.0)
    return h + x


if __name__ == "__main__":
    B, D = 8, 32  # batch=8, size(hidden)=32 (matches nn.Linear(size, size))

    key = jax.random.PRNGKey(0)
    keys = jax.random.split(key, 7)

    # Deterministic synthetic parameters in PyTorch Linear convention:
    # W is (out, in) = (D, D), b is (D,).
    bound = 1.0 / (D ** 0.5)
    params = {
        "w1": jax.random.uniform(keys[0], (D, D), jnp.float32, -bound, bound),
        "b1": jax.random.uniform(keys[1], (D,), jnp.float32, -bound, bound),
        "w2": jax.random.uniform(keys[2], (D, D), jnp.float32, -bound, bound),
        "b2": jax.random.uniform(keys[3], (D,), jnp.float32, -bound, bound),
        "w3": jax.random.uniform(keys[4], (D, D), jnp.float32, -bound, bound),
        "b3": jax.random.uniform(keys[5], (D,), jnp.float32, -bound, bound),
    }
    x = jax.random.normal(keys[6], (B, D), jnp.float32)

    ref = resblock_reference(x, params)

    # f32 path: same semantics as the PyTorch module (tight tolerance).
    prep_f32 = prepare_resblock_params(params, compute_dtype=jnp.float32)
    out_f32 = jax.block_until_ready(resblock_forward(x, prep_f32))
    assert out_f32.shape == (B, D)
    assert jnp.allclose(out_f32, ref, atol=1e-4, rtol=1e-4), "f32 mismatch vs reference"

    # bf16 weights, f32 accumulation and f32 residual (x never rounded to bf16
    # outside the MXU feed): halves HBM weight traffic / VMEM residency.
    prep_bf16 = prepare_resblock_params(params, compute_dtype=jnp.bfloat16)
    out_bf16 = jax.block_until_ready(resblock_forward(x, prep_bf16))
    assert out_bf16.shape == (B, D)
    assert jnp.allclose(out_bf16, ref, atol=5e-2, rtol=5e-2), "bf16 mismatch vs reference"

    # Exercise the multi-step pipelined grid + batch-remainder padding path.
    xb = jax.random.normal(keys[6], (100, D), jnp.float32)
    refb = resblock_reference(xb, params)
    outb = jax.block_until_ready(resblock_forward(xb, prep_f32))
    assert outb.shape == (100, D)
    assert jnp.allclose(outb, refb, atol=1e-4, rtol=1e-4), "padded-batch mismatch"

    print("KERNEL_OK")
</pallas_src>

<mosaic_0001>
module attributes {stable_mosaic.version = 11 : i64} {
  func.func @resblock_kernel(%arg0: i32, %arg1: memref<8x128xf32, #tpu.memory_space<vmem>>, %arg2: memref<128x128xf32, #tpu.memory_space<vmem>>, %arg3: memref<1x128xf32, #tpu.memory_space<vmem>>, %arg4: memref<128x128xf32, #tpu.memory_space<vmem>>, %arg5: memref<1x128xf32, #tpu.memory_space<vmem>>, %arg6: memref<128x128xf32, #tpu.memory_space<vmem>>, %arg7: memref<1x128xf32, #tpu.memory_space<vmem>>, %arg8: memref<8x128xf32, #tpu.memory_space<vmem>>) attributes {dimension_semantics = [#tpu.dimension_semantics<parallel>], iteration_bounds = array<i64: 1>, scalar_prefetch = 0 : i64, scratch_operands = 0 : i64, tpu.core_type = #tpu.core_type<tc>, window_params = [{transform_indices = @transform_0, window_bounds = array<i64: 8, 128>}, {pipeline_mode = #tpu.pipeline_mode<synchronous>, transform_indices = @transform_1, window_bounds = array<i64: 128, 128>}, {pipeline_mode = #tpu.pipeline_mode<synchronous>, transform_indices = @transform_2, window_bounds = array<i64: 1, 128>}, {pipeline_mode = #tpu.pipeline_mode<synchronous>, transform_indices = @transform_3, window_bounds = array<i64: 128, 128>}, {pipeline_mode = #tpu.pipeline_mode<synchronous>, transform_indices = @transform_4, window_bounds = array<i64: 1, 128>}, {pipeline_mode = #tpu.pipeline_mode<synchronous>, transform_indices = @transform_5, window_bounds = array<i64: 128, 128>}, {pipeline_mode = #tpu.pipeline_mode<synchronous>, transform_indices = @transform_6, window_bounds = array<i64: 1, 128>}, {transform_indices = @transform_7, window_bounds = array<i64: 8, 128>}]} {
    %c0 = arith.constant 0 : index
    %c0_0 = arith.constant 0 : index
    %0 = vector.load %arg1[%c0, %c0_0] : memref<8x128xf32, #tpu.memory_space<vmem>>, vector<8x128xf32>
    %c0_1 = arith.constant 0 : index
    %c0_2 = arith.constant 0 : index
    %1 = vector.load %arg2[%c0_1, %c0_2] : memref<128x128xf32, #tpu.memory_space<vmem>>, vector<128x128xf32>
    %cst = arith.constant dense<0.000000e+00> : vector<8x128xf32>
    %2 = tpu.matmul %0, %1, %cst {dimension_numbers = #tpu.dot_dimension_numbers<[1], [0], [0], [1], [0, 0, 1, 1], [], []>} : vector<8x128xf32>, vector<128x128xf32>, vector<8x128xf32> -> vector<8x128xf32>
    %c0_3 = arith.constant 0 : index
    %c0_4 = arith.constant 0 : index
    %3 = vector.load %arg3[%c0_3, %c0_4] : memref<1x128xf32, #tpu.memory_space<vmem>>, vector<1x128xf32>
    %4 = vector.broadcast %3 : vector<1x128xf32> to vector<8x128xf32>
    %5 = arith.addf %2, %4 : vector<8x128xf32>
    %cst_5 = arith.constant 0.000000e+00 : f32
    %6 = vector.broadcast %cst_5 : f32 to vector<8x128xf32>
    %7 = arith.maximumf %5, %6 : vector<8x128xf32>
    %c0_6 = arith.constant 0 : index
    %c0_7 = arith.constant 0 : index
    %8 = vector.load %arg4[%c0_6, %c0_7] : memref<128x128xf32, #tpu.memory_space<vmem>>, vector<128x128xf32>
    %cst_8 = arith.constant dense<0.000000e+00> : vector<8x128xf32>
    %9 = tpu.matmul %7, %8, %cst_8 {dimension_numbers = #tpu.dot_dimension_numbers<[1], [0], [0], [1], [0, 0, 1, 1], [], []>} : vector<8x128xf32>, vector<128x128xf32>, vector<8x128xf32> -> vector<8x128xf32>
    %c0_9 = arith.constant 0 : index
    %c0_10 = arith.constant 0 : index
    %10 = vector.load %arg5[%c0_9, %c0_10] : memref<1x128xf32, #tpu.memory_space<vmem>>, vector<1x128xf32>
    %11 = vector.broadcast %10 : vector<1x128xf32> to vector<8x128xf32>
    %12 = arith.addf %9, %11 : vector<8x128xf32>
    %cst_11 = arith.constant 0.000000e+00 : f32
    %13 = vector.broadcast %cst_11 : f32 to vector<8x128xf32>
    %14 = arith.maximumf %12, %13 : vector<8x128xf32>
    %c0_12 = arith.constant 0 : index
    %c0_13 = arith.constant 0 : index
    %15 = vector.load %arg6[%c0_12, %c0_13] : memref<128x128xf32, #tpu.memory_space<vmem>>, vector<128x128xf32>
    %cst_14 = arith.constant dense<0.000000e+00> : vector<8x128xf32>
    %16 = tpu.matmul %14, %15, %cst_14 {dimension_numbers = #tpu.dot_dimension_numbers<[1], [0], [0], [1], [0, 0, 1, 1], [], []>} : vector<8x128xf32>, vector<128x128xf32>, vector<8x128xf32> -> vector<8x128xf32>
    %c0_15 = arith.constant 0 : index
    %c0_16 = arith.constant 0 : index
    %17 = vector.load %arg7[%c0_15, %c0_16] : memref<1x128xf32, #tpu.memory_space<vmem>>, vector<1x128xf32>
    %18 = vector.broadcast %17 : vector<1x128xf32> to vector<8x128xf32>
    %19 = arith.addf %16, %18 : vector<8x128xf32>
    %cst_17 = arith.constant 0.000000e+00 : f32
    %20 = vector.broadcast %cst_17 : f32 to vector<8x128xf32>
    %21 = arith.maximumf %19, %20 : vector<8x128xf32>
    %22 = arith.addf %21, %0 : vector<8x128xf32>
    %c0_18 = arith.constant 0 : index
    %c0_19 = arith.constant 0 : index
    %23 = vector.load %arg8[%c0_18, %c0_19] : memref<8x128xf32, #tpu.memory_space<vmem>>, vector<8x128xf32>
    tpu.vector_store %arg8[%c0_18, %c0_19], %22 {strides = array<i32>} : memref<8x128xf32, #tpu.memory_space<vmem>>, vector<8x128xf32>,
    return
  }
  func.func @transform_0(%arg0: i32) -> (i32, i32) {
    %c0_i32 = arith.constant 0 : i32
    %c0_i32_0 = arith.constant 0 : i32
    return %arg0, %c0_i32 : i32, i32
  }
  func.func @transform_1(%arg0: i32) -> (i32, i32) {
    %c0_i32 = arith.constant 0 : i32
    %c0_i32_0 = arith.constant 0 : i32
    %c0_i32_1 = arith.constant 0 : i32
    return %c0_i32, %c0_i32_0 : i32, i32
  }
  func.func @transform_2(%arg0: i32) -> (i32, i32) {
    %c0_i32 = arith.constant 0 : i32
    %c0_i32_0 = arith.constant 0 : i32
    %c0_i32_1 = arith.constant 0 : i32
    return %c0_i32, %c0_i32_0 : i32, i32
  }
  func.func @transform_3(%arg0: i32) -> (i32, i32) {
    %c0_i32 = arith.constant 0 : i32
    %c0_i32_0 = arith.constant 0 : i32
    %c0_i32_1 = arith.constant 0 : i32
    return %c0_i32, %c0_i32_0 : i32, i32
  }
  func.func @transform_4(%arg0: i32) -> (i32, i32) {
    %c0_i32 = arith.constant 0 : i32
    %c0_i32_0 = arith.constant 0 : i32
    %c0_i32_1 = arith.constant 0 : i32
    return %c0_i32, %c0_i32_0 : i32, i32
  }
  func.func @transform_5(%arg0: i32) -> (i32, i32) {
    %c0_i32 = arith.constant 0 : i32
    %c0_i32_0 = arith.constant 0 : i32
    %c0_i32_1 = arith.constant 0 : i32
    return %c0_i32, %c0_i32_0 : i32, i32
  }
  func.func @transform_6(%arg0: i32) -> (i32, i32) {
    %c0_i32 = arith.constant 0 : i32
    %c0_i32_0 = arith.constant 0 : i32
    %c0_i32_1 = arith.constant 0 : i32
    return %c0_i32, %c0_i32_0 : i32, i32
  }
  func.func @transform_7(%arg0: i32) -> (i32, i32) {
    %c0_i32 = arith.constant 0 : i32
    %c0_i32_0 = arith.constant 0 : i32
    return %arg0, %c0_i32 : i32, i32
  }
}

module attributes {stable_mosaic.version = 11 : i64} {
  func.func @resblock_kernel(%arg0: i32, %arg1: memref<8x128xf32, #tpu.memory_space<vmem>>, %arg2: memref<128x128xf32, #tpu.memory_space<vmem>>, %arg3: memref<1x128xf32, #tpu.memory_space<vmem>>, %arg4: memref<128x128xf32, #tpu.memory_space<vmem>>, %arg5: memref<1x128xf32, #tpu.memory_space<vmem>>, %arg6: memref<128x128xf32, #tpu.memory_space<vmem>>, %arg7: memref<1x128xf32, #tpu.memory_space<vmem>>, %arg8: memref<8x128xf32, #tpu.memory_space<vmem>>) attributes {dimension_semantics = [#tpu.dimension_semantics<parallel>], iteration_bounds = array<i64: 1>, scalar_prefetch = 0 : i64, scratch_operands = 0 : i64, tpu.core_type = #tpu.core_type<tc>, window_params = [{transform_indices = @transform_0, window_bounds = array<i64: 8, 128>}, {pipeline_mode = #tpu.pipeline_mode<synchronous>, transform_indices = @transform_1, window_bounds = array<i64: 128, 128>}, {pipeline_mode = #tpu.pipeline_mode<synchronous>, transform_indices = @transform_2, window_bounds = array<i64: 1, 128>}, {pipeline_mode = #tpu.pipeline_mode<synchronous>, transform_indices = @transform_3, window_bounds = array<i64: 128, 128>}, {pipeline_mode = #tpu.pipeline_mode<synchronous>, transform_indices = @transform_4, window_bounds = array<i64: 1, 128>}, {pipeline_mode = #tpu.pipeline_mode<synchronous>, transform_indices = @transform_5, window_bounds = array<i64: 128, 128>}, {pipeline_mode = #tpu.pipeline_mode<synchronous>, transform_indices = @transform_6, window_bounds = array<i64: 1, 128>}, {transform_indices = @transform_7, window_bounds = array<i64: 8, 128>}]} {
    %c0 = arith.constant 0 : index
    %c0_0 = arith.constant 0 : index
    %0 = vector.load %arg1[%c0, %c0_0] : memref<8x128xf32, #tpu.memory_space<vmem>>, vector<8x128xf32>
    %c0_1 = arith.constant 0 : index
    %c0_2 = arith.constant 0 : index
    %1 = vector.load %arg2[%c0_1, %c0_2] : memref<128x128xf32, #tpu.memory_space<vmem>>, vector<128x128xf32>
    %cst = arith.constant dense<0.000000e+00> : vector<8x128xf32>
    %2 = tpu.matmul %0, %1, %cst {dimension_numbers = #tpu.dot_dimension_numbers<[1], [0], [0], [1], [0, 0, 1, 1], [], []>} : vector<8x128xf32>, vector<128x128xf32>, vector<8x128xf32> -> vector<8x128xf32>
    %c0_3 = arith.constant 0 : index
    %c0_4 = arith.constant 0 : index
    %3 = vector.load %arg3[%c0_3, %c0_4] : memref<1x128xf32, #tpu.memory_space<vmem>>, vector<1x128xf32>
    %4 = vector.broadcast %3 : vector<1x128xf32> to vector<8x128xf32>
    %5 = arith.addf %2, %4 : vector<8x128xf32>
    %cst_5 = arith.constant 0.000000e+00 : f32
    %6 = vector.broadcast %cst_5 : f32 to vector<8x128xf32>
    %7 = arith.maximumf %5, %6 : vector<8x128xf32>
    %c0_6 = arith.constant 0 : index
    %c0_7 = arith.constant 0 : index
    %8 = vector.load %arg4[%c0_6, %c0_7] : memref<128x128xf32, #tpu.memory_space<vmem>>, vector<128x128xf32>
    %cst_8 = arith.constant dense<0.000000e+00> : vector<8x128xf32>
    %9 = tpu.matmul %7, %8, %cst_8 {dimension_numbers = #tpu.dot_dimension_numbers<[1], [0], [0], [1], [0, 0, 1, 1], [], []>} : vector<8x128xf32>, vector<128x128xf32>, vector<8x128xf32> -> vector<8x128xf32>
    %c0_9 = arith.constant 0 : index
    %c0_10 = arith.constant 0 : index
    %10 = vector.load %arg5[%c0_9, %c0_10] : memref<1x128xf32, #tpu.memory_space<vmem>>, vector<1x128xf32>
    %11 = vector.broadcast %10 : vector<1x128xf32> to vector<8x128xf32>
    %12 = arith.addf %9, %11 : vector<8x128xf32>
    %cst_11 = arith.constant 0.000000e+00 : f32
    %13 = vector.broadcast %cst_11 : f32 to vector<8x128xf32>
    %14 = arith.maximumf %12, %13 : vector<8x128xf32>
    %c0_12 = arith.constant 0 : index
    %c0_13 = arith.constant 0 : index
    %15 = vector.load %arg6[%c0_12, %c0_13] : memref<128x128xf32, #tpu.memory_space<vmem>>, vector<128x128xf32>
    %cst_14 = arith.constant dense<0.000000e+00> : vector<8x128xf32>
    %16 = tpu.matmul %14, %15, %cst_14 {dimension_numbers = #tpu.dot_dimension_numbers<[1], [0], [0], [1], [0, 0, 1, 1], [], []>} : vector<8x128xf32>, vector<128x128xf32>, vector<8x128xf32> -> vector<8x128xf32>
    %c0_15 = arith.constant 0 : index
    %c0_16 = arith.constant 0 : index
    %17 = vector.load %arg7[%c0_15, %c0_16] : memref<1x128xf32, #tpu.memory_space<vmem>>, vector<1x128xf32>
    %18 = vector.broadcast %17 : vector<1x128xf32> to vector<8x128xf32>
    %19 = arith.addf %16, %18 : vector<8x128xf32>
    %cst_17 = arith.constant 0.000000e+00 : f32
    %20 = vector.broadcast %cst_17 : f32 to vector<8x128xf32>
    %21 = arith.maximumf %19, %20 : vector<8x128xf32>
    %22 = arith.addf %21, %0 : vector<8x128xf32>
    %c0_18 = arith.constant 0 : index
    %c0_19 = arith.constant 0 : index
    %23 = vector.load %arg8[%c0_18, %c0_19] : memref<8x128xf32, #tpu.memory_space<vmem>>, vector<8x128xf32>
    tpu.vector_store %arg8[%c0_18, %c0_19], %22 {strides = array<i32>} : memref<8x128xf32, #tpu.memory_space<vmem>>, vector<8x128xf32>,
    return
  }
  func.func @transform_0(%arg0: i32) -> (i32, i32) {
    %c0_i32 = arith.constant 0 : i32
    %c0_i32_0 = arith.constant 0 : i32
    return %arg0, %c0_i32 : i32, i32
  }
  func.func @transform_1(%arg0: i32) -> (i32, i32) {
    %c0_i32 = arith.constant 0 : i32
    %c0_i32_0 = arith.constant 0 : i32
    %c0_i32_1 = arith.constant 0 : i32
    return %c0_i32, %c0_i32_0 : i32, i32
  }
  func.func @transform_2(%arg0: i32) -> (i32, i32) {
    %c0_i32 = arith.constant 0 : i32
    %c0_i32_0 = arith.constant 0 : i32
    %c0_i32_1 = arith.constant 0 : i32
    return %c0_i32, %c0_i32_0 : i32, i32
  }
  func.func @transform_3(%arg0: i32) -> (i32, i32) {
    %c0_i32 = arith.constant 0 : i32
    %c0_i32_0 = arith.constant 0 : i32
    %c0_i32_1 = arith.constant 0 : i32
    return %c0_i32, %c0_i32_0 : i32, i32
  }
  func.func @transform_4(%arg0: i32) -> (i32, i32) {
    %c0_i32 = arith.constant 0 : i32
    %c0_i32_0 = arith.constant 0 : i32
    %c0_i32_1 = arith.constant 0 : i32
    return %c0_i32, %c0_i32_0 : i32, i32
  }
  func.func @transform_5(%arg0: i32) -> (i32, i32) {
    %c0_i32 = arith.constant 0 : i32
    %c0_i32_0 = arith.constant 0 : i32
    %c0_i32_1 = arith.constant 0 : i32
    return %c0_i32, %c0_i32_0 : i32, i32
  }
  func.func @transform_6(%arg0: i32) -> (i32, i32) {
    %c0_i32 = arith.constant 0 : i32
    %c0_i32_0 = arith.constant 0 : i32
    %c0_i32_1 = arith.constant 0 : i32
    return %c0_i32, %c0_i32_0 : i32, i32
  }
  func.func @transform_7(%arg0: i32) -> (i32, i32) {
    %c0_i32 = arith.constant 0 : i32
    %c0_i32_0 = arith.constant 0 : i32
    return %arg0, %c0_i32 : i32, i32
  }
}

</mosaic_0001>

<bundles_post_ra>
// kernel: tpu_custom_call.1
= control target key start
LH: loop header
LB: loop body
LE: loop exit
PB: predicated region body
PF: predicated region fallthrough
CT: control target
= control target key end

     0   :  { %12 = vsyncpa [#allocation3], 0  ;;  %s442_s0 = inlined_call_operand.hbm [shape: f32[8,128], index: 0, kind: input, shape index: {}]   ;;  %s443_s1 = inlined_call_operand.hbm [shape: f32[128,128], index: 1, kind: input, shape index: {}]   ;;  %s444_s2 = inlined_call_operand.vmem [shape: f32[1,128], index: 2, kind: input, shape index: {}]   ;;  %s445_s3 = inlined_call_operand.hbm [shape: f32[128,128], index: 3, kind: input, shape index: {}]   ;;  %s446_s4 = inlined_call_operand.vmem [shape: f32[1,128], index: 4, kind: input, shape index: {}]   ;;  %s447_s5 = inlined_call_operand.hbm [shape: f32[128,128], index: 5, kind: input, shape index: {}]   ;;  %s448_s6 = inlined_call_operand.vmem [shape: f32[1,128], index: 6, kind: input, shape index: {}]   ;;  %s449_s7 = inlined_call_operand.hbm [shape: f32[8,128], index: 7, kind: output, shape index: {}]  }
   0x1   :  { %13 = vsyncpa [#allocation6], 0 }
   0x2   :  { %14 = vsyncpa [#allocation9], 0  ;;  %s31_s26 = sshll.u32 %s443_s1, 4  ;;  %s32_s26 = int_to_ptr.hbm [resolvable:$true] %s31_s26 }
   0x3   :  { %15 = vsyncpa [#allocation4], 0  ;;  %s371_s27 = smov [#allocation5]   ;;  %s21_s8 = sshll.u32 %s442_s0, 4  ;;  %s22_s8 = int_to_ptr.hbm [resolvable:$true] %s21_s8 }
   0x4   :  { %s33_s28 = sshll.u32 %s371_s27, 4  ;;  %s372_s9 = smov 128   ;;  %s34_s28 = int_to_ptr.vmem [resolvable:$true] %s33_s28 }
   0x5   :  { %s373_s10 = smov 8   ;;  %s374_s11 = smov [#allocation2]  }
   0x6   :  { %39 = dma.hbm_to_vmem [thread:$0]  %s32_s26, 2048, %s34_s28, [#allocation6], %s372_s9, %s372_s9, %s373_s10  }
   0x7   :  { %s23_s12 = sshll.u32 %s374_s11, 4  ;;  %s46_s15 = sshll.u32 %s445_s3, 4  ;;  %s24_s12 = int_to_ptr.vmem [resolvable:$true] %s23_s12  ;;  %s47_s15 = int_to_ptr.hbm [resolvable:$true] %s46_s15 }
   0x8   :  { %26 = dma.hbm_to_vmem [thread:$0]  %s22_s8, 128, %s24_s12, [#allocation3]  }
   0x9   :  { %s61_s17 = sshll.u32 %s447_s5, 4  ;;  %s375_s18 = smov [#allocation7]   ;;  %s62_s17 = int_to_ptr.hbm [resolvable:$true] %s61_s17 }
   0xa   :  { %s48_s19 = sshll.u32 %s375_s18, 4  ;;  %s376_s0 = smov [#allocation8]   ;;  %s49_s19 = int_to_ptr.vmem [resolvable:$true] %s48_s19 }
   0xb   :  { %54 = dma.hbm_to_vmem [thread:$0]  %s47_s15, 2048, %s49_s19, [#allocation6], %s372_s9, %s372_s9, %s373_s10  }
   0xc   :  { %s63_s20 = sshll.u32 %s376_s0, 4  ;;  %s64_s20 = int_to_ptr.vmem [resolvable:$true] %s63_s20 }
   0xd   :  { %69 = dma.hbm_to_vmem [thread:$0]  %s62_s17, 2048, %s64_s20, [#allocation9], %s372_s9, %s372_s9, %s373_s10  }
   0xe   :  { %363 = dma.done.wait [#allocation3], 128  }
   0xf   :  { %364 = vsyncadd [#allocation3], 4294967168 }
  0x10   :  { %365 = dma.done.wait [#allocation6], 4096  }
  0x11   :  { %366 = vsyncadd [#allocation6], 4294963200 }
  0x12   :  { %367 = dma.done.wait [#allocation9], 2048  }
  0x13   :  { %368 = vsyncadd [#allocation9], 4294965248  ;;  %v104_v0 = vld [vmem:[#allocation5 + $0x78] sm:$0xff]  ;;  %v103_v1 = vld [vmem:[#allocation5 + $0x70] sm:$0xff]  ;;  %s377_s24 = smov [#allocation10]   ;;  %s221_s28 = sshll.u32 %s449_s7, 4  ;;  %s222_s28 = int_to_ptr.hbm [resolvable:$true] %s221_s28 }
  0x14   :  { %109 = vmatpush.msra.mxu0 %v104_v0  ;;  %v102_v2 = vld [vmem:[#allocation5 + $0x68] sm:$0xff]  ;;  %v101_v3 = vld [vmem:[#allocation5 + $0x60] sm:$0xff]  ;;  %v145_v4 = vld [vmem:[#allocation7 + $0x78] sm:$0xff]  ;;  %s219_s25 = sshll.u32 %s377_s24, 4  ;;  %s220_s25 = int_to_ptr.vmem [resolvable:$true] %s219_s25 }
  0x15   :  { %v100_v5 = vld [vmem:[#allocation5 + $0x58] sm:$0xff]  ;;  %150 = vmatpush.msra.mxu1 %v145_v4  ;;  %v144_v6 = vld [vmem:[#allocation7 + $0x70] sm:$0xff]  ;;  %v143_v7 = vld [vmem:[#allocation7 + $0x68] sm:$0xff] }
  0x16   :  { %110 = vmatpush.msra.mxu0 %v103_v1  ;;  %v99_v8 = vld [vmem:[#allocation5 + $0x50] sm:$0xff]  ;;  %v142_v9 = vld [vmem:[#allocation7 + $0x60] sm:$0xff]  ;;  %v98_v10 = vld [vmem:[#allocation5 + $0x48] sm:$0xff] }
  0x17   :  { %151 = vmatpush.msra.mxu1 %v144_v6  ;;  %v141_v11 = vld [vmem:[#allocation7 + $0x58] sm:$0xff]  ;;  %v97_v12 = vld [vmem:[#allocation5 + $0x40] sm:$0xff]  ;;  %v140_v13 = vld [vmem:[#allocation7 + $0x50] sm:$0xff] }
  0x18   :  { %111 = vmatpush.msra.mxu0 %v102_v2  ;;  %v96_v14 = vld [vmem:[#allocation5 + $0x38] sm:$0xff]  ;;  %v139_v15 = vld [vmem:[#allocation7 + $0x48] sm:$0xff]  ;;  %v95_v16 = vld [vmem:[#allocation5 + $0x30] sm:$0xff] }
  0x19   :  { %152 = vmatpush.msra.mxu1 %v143_v7  ;;  %v138_v17 = vld [vmem:[#allocation7 + $0x40] sm:$0xff]  ;;  %v94_v18 = vld [vmem:[#allocation5 + $0x28] sm:$0xff]  ;;  %v137_v19 = vld [vmem:[#allocation7 + $0x38] sm:$0xff] }
  0x1a   :  { %112 = vmatpush.msra.mxu0 %v101_v3  ;;  %v93_v20 = vld [vmem:[#allocation5 + $0x20] sm:$0xff]  ;;  %v136_v21 = vld [vmem:[#allocation7 + $0x30] sm:$0xff]  ;;  %v92_v22 = vld [vmem:[#allocation5 + $0x18] sm:$0xff] }
  0x1b   :  { %153 = vmatpush.msra.mxu1 %v142_v9  ;;  %v135_v23 = vld [vmem:[#allocation7 + $0x28] sm:$0xff]  ;;  %v91_v24 = vld [vmem:[#allocation5 + $0x10] sm:$0xff]  ;;  %v134_v25 = vld [vmem:[#allocation7 + $0x20] sm:$0xff] }
  0x1c   :  { %113 = vmatpush.msra.mxu0 %v100_v5  ;;  %v90_v26 = vld [vmem:[#allocation5 + $0x8] sm:$0xff]  ;;  %v133_v27 = vld [vmem:[#allocation7 + $0x18] sm:$0xff]  ;;  %v89_v28 = vld [vmem:[#allocation5] sm:$0xff] }
  0x1d   :  { %154 = vmatpush.msra.mxu1 %v141_v11  ;;  %v88_v29 = vld [vmem:[#allocation2] sm:$0xff]  ;;  %v132_v30 = vld [vmem:[#allocation7 + $0x10] sm:$0xff]  ;;  %v131_v31 = vld [vmem:[#allocation7 + $0x8] sm:$0xff] }
  0x1e   :  { %114 = vmatpush.msra.mxu0 %v99_v8  ;;  %v130_v32 = vld [vmem:[#allocation7] sm:$0xff]  ;;  %v186_v33 = vld [vmem:[#allocation8 + $0x78] sm:$0xff]  ;;  %v185_v34 = vld [vmem:[#allocation8 + $0x70] sm:$0xff] }
  0x1f   :  { %155 = vmatpush.msra.mxu1 %v140_v13  ;;  %191 = vmatpush.msra.mxu2 %v186_v33  ;;  %v184_v35 = vld [vmem:[#allocation8 + $0x68] sm:$0xff]  ;;  %v183_v36 = vld [vmem:[#allocation8 + $0x60] sm:$0xff]  ;;  %v182_v37 = vld [vmem:[#allocation8 + $0x58] sm:$0xff] }
  0x20   :  { %115 = vmatpush.msra.mxu0 %v98_v10  ;;  %v181_v38 = vld [vmem:[#allocation8 + $0x50] sm:$0xff]  ;;  %v180_v39 = vld [vmem:[#allocation8 + $0x48] sm:$0xff]  ;;  %v179_v40 = vld [vmem:[#allocation8 + $0x40] sm:$0xff] }
  0x21   :  { %156 = vmatpush.msra.mxu1 %v139_v15  ;;  %192 = vmatpush.msra.mxu2 %v185_v34  ;;  %v178_v41 = vld [vmem:[#allocation8 + $0x38] sm:$0xff]  ;;  %v177_v42 = vld [vmem:[#allocation8 + $0x30] sm:$0xff]  ;;  %v176_v43 = vld [vmem:[#allocation8 + $0x28] sm:$0xff] }
  0x22   :  { %116 = vmatpush.msra.mxu0 %v97_v12  ;;  %v175_v44 = vld [vmem:[#allocation8 + $0x20] sm:$0xff]  ;;  %v174_v45 = vld [vmem:[#allocation8 + $0x18] sm:$0xff]  ;;  %v173_v50 = vld [vmem:[#allocation8 + $0x10] sm:$0xff] }
  0x23   :  { %157 = vmatpush.msra.mxu1 %v138_v17  ;;  %193 = vmatpush.msra.mxu2 %v184_v35  ;;  %v240_v46 = vld [vmem:[%s444_s2] ss:$0 sm:$0xff]  ;;  %v172_v51 = vld [vmem:[#allocation8 + $0x8] sm:$0xff]  ;;  %v171_v52 = vld [vmem:[#allocation8] sm:$0xff] }
  0x24   :  { %117 = vmatpush.msra.mxu0 %v96_v14  ;;  %v241_v53 = vld [vmem:[%s446_s4] ss:$0 sm:$0xff] }
  0x25   :  { %158 = vmatpush.msra.mxu1 %v137_v19  ;;  %194 = vmatpush.msra.mxu2 %v183_v36  ;;  %v242_v57 = vld [vmem:[%s448_s6] ss:$0 sm:$0xff] }
  0x26   :  { %118 = vmatpush.msra.mxu0 %v95_v16 }
  0x27   :  { %159 = vmatpush.msra.mxu1 %v136_v21  ;;  %195 = vmatpush.msra.mxu2 %v182_v37 }
  0x28   :  { %119 = vmatpush.msra.mxu0 %v94_v18 }
  0x29   :  { %160 = vmatpush.msra.mxu1 %v135_v23  ;;  %196 = vmatpush.msra.mxu2 %v181_v38 }
  0x2a   :  { %120 = vmatpush.msra.mxu0 %v93_v20 }
  0x2b   :  { %161 = vmatpush.msra.mxu1 %v134_v25  ;;  %197 = vmatpush.msra.mxu2 %v180_v39 }
  0x2c   :  { %121 = vmatpush.msra.mxu0 %v92_v22 }
  0x2d   :  { %162 = vmatpush.msra.mxu1 %v133_v27  ;;  %198 = vmatpush.msra.mxu2 %v179_v40 }
  0x2e   :  { %122 = vmatpush.msra.mxu0 %v91_v24 }
  0x2f   :  { %163 = vmatpush.msra.mxu1 %v132_v30  ;;  %199 = vmatpush.msra.mxu2 %v178_v41 }
  0x30   :  { %123 = vmatpush.msra.mxu0 %v90_v26 }
  0x31   :  { %164 = vmatpush.msra.mxu1 %v131_v31  ;;  %200 = vmatpush.msra.mxu2 %v177_v42 }
  0x32   :  { %124 = vmatpush.msra.mxu0 %v89_v28 }
  0x33   :  { %125 = vmatmul.f32.vlgmr.msra.gmra.mxu0 %v88_v29  ;;  %165 = vmatpush.msra.mxu1 %v130_v32 }
  0x34   :  { %201 = vmatpush.msra.mxu2 %v176_v43 }
  0x36   :  { %202 = vmatpush.msra.mxu2 %v175_v44 }
  0x38   :  { %203 = vmatpush.msra.mxu2 %v174_v45 }
  0x3a   :  { %204 = vmatpush.msra.mxu2 %v173_v50 }
  0x3c   :  { %205 = vmatpush.msra.mxu2 %v172_v51 }
  0x3e   :  { %206 = vmatpush.msra.mxu2 %v171_v52 }
  0xb0   :  { %v126_v47 = vpop.f32.mrf.mxu0 }
  0xb1   :  { %v127_v48 = vadd.f32 %v240_v46, %v126_v47 }
  0xb3   :  { %v129_v49 = vmax.f32 %v127_v48, 0.0 }
  0xb5   :  { %166 = vmatmul.f32.vlgmr.msra.gmra.mxu1 %v129_v49 }
 0x132   :  { %v167_v54 = vpop.f32.mrf.mxu1 }
 0x133   :  { %v168_v55 = vadd.f32 %v241_v53, %v167_v54 }
 0x135   :  { %v170_v56 = vmax.f32 %v168_v55, 0.0 }
 0x137   :  { %207 = vmatmul.f32.vlgmr.msra.gmra.mxu2 %v170_v56 }
 0x1ba   :  { %v208_v58 = vpop.f32.mrf.mxu2 }
 0x1bb   :  { %v209_v59 = vadd.f32 %v242_v57, %v208_v58 }
 0x1bd   :  { %v211_v60 = vmax.f32 %v209_v59, 0.0 }
 0x1bf   :  { %v212_v61 = vadd.f32 %v211_v60, %v88_v29 }
 0x1c1   :  { %213 = vst [vmem:[#allocation10] sm:$0xff] %v212_v61 }
 0x1c2   :  { %224 = dma.vmem_to_hbm [thread:$0]  %s220_s25, 128, %s222_s28, [#allocation4]  }
 0x1c3   :  { %369 = dma.done.wait [#allocation4], 128  }
 0x1c4   :  { %370 = vsyncadd [#allocation4], 4294967168 }
 0x1c5   :  { %229 = vsyncpa [#allocation3], 1 }
 0x1c6   :  { %230 = vsyncpa [#allocation6], 1 }
 0x1c7   :  { %231 = vsyncpa [#allocation9], 1 }
 0x1c8   :  { %232 = vsyncpa [#allocation4], 1 }

// kernel: tpu_custom_call.1
= control target key start
LH: loop header
LB: loop body
LE: loop exit
PB: predicated region body
PF: predicated region fallthrough
CT: control target
= control target key end

     0   :  { %12 = vsyncpa [#allocation3], 0  ;;  %s442_s0 = inlined_call_operand.hbm [shape: f32[8,128], index: 0, kind: input, shape index: {}]   ;;  %s443_s1 = inlined_call_operand.hbm [shape: f32[128,128], index: 1, kind: input, shape index: {}]   ;;  %s444_s2 = inlined_call_operand.vmem [shape: f32[1,128], index: 2, kind: input, shape index: {}]   ;;  %s445_s3 = inlined_call_operand.hbm [shape: f32[128,128], index: 3, kind: input, shape index: {}]   ;;  %s446_s4 = inlined_call_operand.vmem [shape: f32[1,128], index: 4, kind: input, shape index: {}]   ;;  %s447_s5 = inlined_call_operand.hbm [shape: f32[128,128], index: 5, kind: input, shape index: {}]   ;;  %s448_s6 = inlined_call_operand.vmem [shape: f32[1,128], index: 6, kind: input, shape index: {}]   ;;  %s449_s7 = inlined_call_operand.hbm [shape: f32[8,128], index: 7, kind: output, shape index: {}]  }
   0x1   :  { %13 = vsyncpa [#allocation6], 0 }
   0x2   :  { %14 = vsyncpa [#allocation9], 0  ;;  %s31_s26 = sshll.u32 %s443_s1, 4  ;;  %s32_s26 = int_to_ptr.hbm [resolvable:$true] %s31_s26 }
   0x3   :  { %15 = vsyncpa [#allocation4], 0  ;;  %s371_s27 = smov [#allocation5]   ;;  %s21_s8 = sshll.u32 %s442_s0, 4  ;;  %s22_s8 = int_to_ptr.hbm [resolvable:$true] %s21_s8 }
   0x4   :  { %s33_s28 = sshll.u32 %s371_s27, 4  ;;  %s372_s9 = smov 128   ;;  %s34_s28 = int_to_ptr.vmem [resolvable:$true] %s33_s28 }
   0x5   :  { %s373_s10 = smov 8   ;;  %s374_s11 = smov [#allocation2]  }
   0x6   :  { %39 = dma.hbm_to_vmem [thread:$0]  %s32_s26, 2048, %s34_s28, [#allocation6], %s372_s9, %s372_s9, %s373_s10  }
   0x7   :  { %s23_s12 = sshll.u32 %s374_s11, 4  ;;  %s46_s15 = sshll.u32 %s445_s3, 4  ;;  %s24_s12 = int_to_ptr.vmem [resolvable:$true] %s23_s12  ;;  %s47_s15 = int_to_ptr.hbm [resolvable:$true] %s46_s15 }
   0x8   :  { %26 = dma.hbm_to_vmem [thread:$0]  %s22_s8, 128, %s24_s12, [#allocation3]  }
   0x9   :  { %s61_s17 = sshll.u32 %s447_s5, 4  ;;  %s375_s18 = smov [#allocation7]   ;;  %s62_s17 = int_to_ptr.hbm [resolvable:$true] %s61_s17 }
   0xa   :  { %s48_s19 = sshll.u32 %s375_s18, 4  ;;  %s376_s0 = smov [#allocation8]   ;;  %s49_s19 = int_to_ptr.vmem [resolvable:$true] %s48_s19 }
   0xb   :  { %54 = dma.hbm_to_vmem [thread:$0]  %s47_s15, 2048, %s49_s19, [#allocation6], %s372_s9, %s372_s9, %s373_s10  }
   0xc   :  { %s63_s20 = sshll.u32 %s376_s0, 4  ;;  %s64_s20 = int_to_ptr.vmem [resolvable:$true] %s63_s20 }
   0xd   :  { %69 = dma.hbm_to_vmem [thread:$0]  %s62_s17, 2048, %s64_s20, [#allocation9], %s372_s9, %s372_s9, %s373_s10  }
   0xe   :  { %363 = dma.done.wait [#allocation3], 128  }
   0xf   :  { %364 = vsyncadd [#allocation3], 4294967168 }
  0x10   :  { %365 = dma.done.wait [#allocation6], 4096  }
  0x11   :  { %366 = vsyncadd [#allocation6], 4294963200 }
  0x12   :  { %367 = dma.done.wait [#allocation9], 2048  }
  0x13   :  { %368 = vsyncadd [#allocation9], 4294965248  ;;  %v104_v0 = vld [vmem:[#allocation5 + $0x78] sm:$0xff]  ;;  %v103_v1 = vld [vmem:[#allocation5 + $0x70] sm:$0xff]  ;;  %s377_s24 = smov [#allocation10]   ;;  %s221_s28 = sshll.u32 %s449_s7, 4  ;;  %s222_s28 = int_to_ptr.hbm [resolvable:$true] %s221_s28 }
  0x14   :  { %109 = vmatpush.msra.mxu0 %v104_v0  ;;  %v102_v2 = vld [vmem:[#allocation5 + $0x68] sm:$0xff]  ;;  %v101_v3 = vld [vmem:[#allocation5 + $0x60] sm:$0xff]  ;;  %v145_v4 = vld [vmem:[#allocation7 + $0x78] sm:$0xff]  ;;  %s219_s25 = sshll.u32 %s377_s24, 4  ;;  %s220_s25 = int_to_ptr.vmem [resolvable:$true] %s219_s25 }
  0x15   :  { %v100_v5 = vld [vmem:[#allocation5 + $0x58] sm:$0xff]  ;;  %150 = vmatpush.msra.mxu1 %v145_v4  ;;  %v144_v6 = vld [vmem:[#allocation7 + $0x70] sm:$0xff]  ;;  %v143_v7 = vld [vmem:[#allocation7 + $0x68] sm:$0xff] }
  0x16   :  { %110 = vmatpush.msra.mxu0 %v103_v1  ;;  %v99_v8 = vld [vmem:[#allocation5 + $0x50] sm:$0xff]  ;;  %v142_v9 = vld [vmem:[#allocation7 + $0x60] sm:$0xff]  ;;  %v98_v10 = vld [vmem:[#allocation5 + $0x48] sm:$0xff] }
  0x17   :  { %151 = vmatpush.msra.mxu1 %v144_v6  ;;  %v141_v11 = vld [vmem:[#allocation7 + $0x58] sm:$0xff]  ;;  %v97_v12 = vld [vmem:[#allocation5 + $0x40] sm:$0xff]  ;;  %v140_v13 = vld [vmem:[#allocation7 + $0x50] sm:$0xff] }
  0x18   :  { %111 = vmatpush.msra.mxu0 %v102_v2  ;;  %v96_v14 = vld [vmem:[#allocation5 + $0x38] sm:$0xff]  ;;  %v139_v15 = vld [vmem:[#allocation7 + $0x48] sm:$0xff]  ;;  %v95_v16 = vld [vmem:[#allocation5 + $0x30] sm:$0xff] }
  0x19   :  { %152 = vmatpush.msra.mxu1 %v143_v7  ;;  %v138_v17 = vld [vmem:[#allocation7 + $0x40] sm:$0xff]  ;;  %v94_v18 = vld [vmem:[#allocation5 + $0x28] sm:$0xff]  ;;  %v137_v19 = vld [vmem:[#allocation7 + $0x38] sm:$0xff] }
  0x1a   :  { %112 = vmatpush.msra.mxu0 %v101_v3  ;;  %v93_v20 = vld [vmem:[#allocation5 + $0x20] sm:$0xff]  ;;  %v136_v21 = vld [vmem:[#allocation7 + $0x30] sm:$0xff]  ;;  %v92_v22 = vld [vmem:[#allocation5 + $0x18] sm:$0xff] }
  0x1b   :  { %153 = vmatpush.msra.mxu1 %v142_v9  ;;  %v135_v23 = vld [vmem:[#allocation7 + $0x28] sm:$0xff]  ;;  %v91_v24 = vld [vmem:[#allocation5 + $0x10] sm:$0xff]  ;;  %v134_v25 = vld [vmem:[#allocation7 + $0x20] sm:$0xff] }
  0x1c   :  { %113 = vmatpush.msra.mxu0 %v100_v5  ;;  %v90_v26 = vld [vmem:[#allocation5 + $0x8] sm:$0xff]  ;;  %v133_v27 = vld [vmem:[#allocation7 + $0x18] sm:$0xff]  ;;  %v89_v28 = vld [vmem:[#allocation5] sm:$0xff] }
  0x1d   :  { %154 = vmatpush.msra.mxu1 %v141_v11  ;;  %v88_v29 = vld [vmem:[#allocation2] sm:$0xff]  ;;  %v132_v30 = vld [vmem:[#allocation7 + $0x10] sm:$0xff]  ;;  %v131_v31 = vld [vmem:[#allocation7 + $0x8] sm:$0xff] }
  0x1e   :  { %114 = vmatpush.msra.mxu0 %v99_v8  ;;  %v130_v32 = vld [vmem:[#allocation7] sm:$0xff]  ;;  %v186_v33 = vld [vmem:[#allocation8 + $0x78] sm:$0xff]  ;;  %v185_v34 = vld [vmem:[#allocation8 + $0x70] sm:$0xff] }
  0x1f   :  { %155 = vmatpush.msra.mxu1 %v140_v13  ;;  %191 = vmatpush.msra.mxu2 %v186_v33  ;;  %v184_v35 = vld [vmem:[#allocation8 + $0x68] sm:$0xff]  ;;  %v183_v36 = vld [vmem:[#allocation8 + $0x60] sm:$0xff]  ;;  %v182_v37 = vld [vmem:[#allocation8 + $0x58] sm:$0xff] }
  0x20   :  { %115 = vmatpush.msra.mxu0 %v98_v10  ;;  %v181_v38 = vld [vmem:[#allocation8 + $0x50] sm:$0xff]  ;;  %v180_v39 = vld [vmem:[#allocation8 + $0x48] sm:$0xff]  ;;  %v179_v40 = vld [vmem:[#allocation8 + $0x40] sm:$0xff] }
  0x21   :  { %156 = vmatpush.msra.mxu1 %v139_v15  ;;  %192 = vmatpush.msra.mxu2 %v185_v34  ;;  %v178_v41 = vld [vmem:[#allocation8 + $0x38] sm:$0xff]  ;;  %v177_v42 = vld [vmem:[#allocation8 + $0x30] sm:$0xff]  ;;  %v176_v43 = vld [vmem:[#allocation8 + $0x28] sm:$0xff] }
  0x22   :  { %116 = vmatpush.msra.mxu0 %v97_v12  ;;  %v175_v44 = vld [vmem:[#allocation8 + $0x20] sm:$0xff]  ;;  %v174_v45 = vld [vmem:[#allocation8 + $0x18] sm:$0xff]  ;;  %v173_v50 = vld [vmem:[#allocation8 + $0x10] sm:$0xff] }
  0x23   :  { %157 = vmatpush.msra.mxu1 %v138_v17  ;;  %193 = vmatpush.msra.mxu2 %v184_v35  ;;  %v240_v46 = vld [vmem:[%s444_s2] ss:$0 sm:$0xff]  ;;  %v172_v51 = vld [vmem:[#allocation8 + $0x8] sm:$0xff]  ;;  %v171_v52 = vld [vmem:[#allocation8] sm:$0xff] }
  0x24   :  { %117 = vmatpush.msra.mxu0 %v96_v14  ;;  %v241_v53 = vld [vmem:[%s446_s4] ss:$0 sm:$0xff] }
  0x25   :  { %158 = vmatpush.msra.mxu1 %v137_v19  ;;  %194 = vmatpush.msra.mxu2 %v183_v36  ;;  %v242_v57 = vld [vmem:[%s448_s6] ss:$0 sm:$0xff] }
  0x26   :  { %118 = vmatpush.msra.mxu0 %v95_v16 }
  0x27   :  { %159 = vmatpush.msra.mxu1 %v136_v21  ;;  %195 = vmatpush.msra.mxu2 %v182_v37 }
  0x28   :  { %119 = vmatpush.msra.mxu0 %v94_v18 }
  0x29   :  { %160 = vmatpush.msra.mxu1 %v135_v23  ;;  %196 = vmatpush.msra.mxu2 %v181_v38 }
  0x2a   :  { %120 = vmatpush.msra.mxu0 %v93_v20 }
  0x2b   :  { %161 = vmatpush.msra.mxu1 %v134_v25  ;;  %197 = vmatpush.msra.mxu2 %v180_v39 }
  0x2c   :  { %121 = vmatpush.msra.mxu0 %v92_v22 }
  0x2d   :  { %162 = vmatpush.msra.mxu1 %v133_v27  ;;  %198 = vmatpush.msra.mxu2 %v179_v40 }
  0x2e   :  { %122 = vmatpush.msra.mxu0 %v91_v24 }
  0x2f   :  { %163 = vmatpush.msra.mxu1 %v132_v30  ;;  %199 = vmatpush.msra.mxu2 %v178_v41 }
  0x30   :  { %123 = vmatpush.msra.mxu0 %v90_v26 }
  0x31   :  { %164 = vmatpush.msra.mxu1 %v131_v31  ;;  %200 = vmatpush.msra.mxu2 %v177_v42 }
  0x32   :  { %124 = vmatpush.msra.mxu0 %v89_v28 }
  0x33   :  { %125 = vmatmul.f32.vlgmr.msra.gmra.mxu0 %v88_v29  ;;  %165 = vmatpush.msra.mxu1 %v130_v32 }
  0x34   :  { %201 = vmatpush.msra.mxu2 %v176_v43 }
  0x36   :  { %202 = vmatpush.msra.mxu2 %v175_v44 }
  0x38   :  { %203 = vmatpush.msra.mxu2 %v174_v45 }
  0x3a   :  { %204 = vmatpush.msra.mxu2 %v173_v50 }
  0x3c   :  { %205 = vmatpush.msra.mxu2 %v172_v51 }
  0x3e   :  { %206 = vmatpush.msra.mxu2 %v171_v52 }
  0xb0   :  { %v126_v47 = vpop.f32.mrf.mxu0 }
  0xb1   :  { %v127_v48 = vadd.f32 %v240_v46, %v126_v47 }
  0xb3   :  { %v129_v49 = vmax.f32 %v127_v48, 0.0 }
  0xb5   :  { %166 = vmatmul.f32.vlgmr.msra.gmra.mxu1 %v129_v49 }
 0x132   :  { %v167_v54 = vpop.f32.mrf.mxu1 }
 0x133   :  { %v168_v55 = vadd.f32 %v241_v53, %v167_v54 }
 0x135   :  { %v170_v56 = vmax.f32 %v168_v55, 0.0 }
 0x137   :  { %207 = vmatmul.f32.vlgmr.msra.gmra.mxu2 %v170_v56 }
 0x1ba   :  { %v208_v58 = vpop.f32.mrf.mxu2 }
 0x1bb   :  { %v209_v59 = vadd.f32 %v242_v57, %v208_v58 }
 0x1bd   :  { %v211_v60 = vmax.f32 %v209_v59, 0.0 }
 0x1bf   :  { %v212_v61 = vadd.f32 %v211_v60, %v88_v29 }
 0x1c1   :  { %213 = vst [vmem:[#allocation10] sm:$0xff] %v212_v61 }
 0x1c2   :  { %224 = dma.vmem_to_hbm [thread:$0]  %s220_s25, 128, %s222_s28, [#allocation4]  }
 0x1c3   :  { %369 = dma.done.wait [#allocation4], 128  }
 0x1c4   :  { %370 = vsyncadd [#allocation4], 4294967168 }
 0x1c5   :  { %229 = vsyncpa [#allocation3], 1 }
 0x1c6   :  { %230 = vsyncpa [#allocation6], 1 }
 0x1c7   :  { %231 = vsyncpa [#allocation9], 1 }
 0x1c8   :  { %232 = vsyncpa [#allocation4], 1 }

</bundles_post_ra>
